<compile_context>
chip_gen: v7x
topology: tpu7x:2x2x1
jax: 0.10.0
libtpu: 0.0.40
codegen_flags: <defaults>
</compile_context>

<pallas_src>
import numpy as np
import jax
import jax.numpy as jnp
from jax.experimental import pallas as pl
from jax.experimental.pallas import tpu as pltpu


# ----------------------------------------------------------------------------
# small helpers
# ----------------------------------------------------------------------------
def _logsumexp(x, axis):
    m = jnp.max(x, axis=axis)
    mk = jnp.expand_dims(m, axis)
    return m + jnp.log(jnp.sum(jnp.exp(x - mk), axis=axis))


def _vmem_specs(n):
    return [pl.BlockSpec(memory_space=pltpu.MemorySpace.VMEM) for _ in range(n)]


def _round_up(x, m):
    return ((x + m - 1) // m) * m


# ----------------------------------------------------------------------------
# classifier kernel (gridded over rows, lane-dense padded-N output)
# ----------------------------------------------------------------------------
def _classifier_kernel(h_ref, w_ref, b_ref, o_ref):
    # (TM, H) @ (H, NPAD) + (1, NPAD) -> (TM, NPAD)
    o_ref[...] = (
        jnp.dot(h_ref[...], w_ref[...], preferred_element_type=jnp.float32)
        + b_ref[...]
    )


def classifier_pallas(hidden_2d, w, b):
    """hidden_2d: (M, H) f32; w: (H, K); b: (K,)  ->  (M, K) f32 emissions."""
    M, H = hidden_2d.shape
    K = w.shape[1]
    NPAD = 128                                   # lane-dense output store
    w_pad = jnp.zeros((H, NPAD), jnp.float32).at[:, :K].set(w.astype(jnp.float32))
    b_pad = jnp.zeros((1, NPAD), jnp.float32).at[0, :K].set(b.astype(jnp.float32))

    M_pad = _round_up(M, 8)
    if M_pad != M:
        hidden_2d = jnp.pad(hidden_2d, ((0, M_pad - M), (0, 0)))
    TM = min(256, M_pad)                         # row tile (multiple of 8)
    grid = (pl.cdiv(M_pad, TM),)

    out = pl.pallas_call(
        _classifier_kernel,
        out_shape=jax.ShapeDtypeStruct((M_pad, NPAD), jnp.float32),
        grid=grid,
        in_specs=[
            pl.BlockSpec((TM, H), lambda i: (i, 0)),
            pl.BlockSpec((H, NPAD), lambda i: (0, 0)),
            pl.BlockSpec((1, NPAD), lambda i: (0, 0)),
        ],
        out_specs=pl.BlockSpec((TM, NPAD), lambda i: (i, 0)),
        compiler_params=pltpu.CompilerParams(
            dimension_semantics=("parallel",)),
        cost_estimate=pl.CostEstimate(
            flops=2 * M_pad * H * NPAD,
            transcendentals=0,
            bytes_accessed=4 * (M_pad * H + H * NPAD + NPAD + M_pad * NPAD)),
    )(hidden_2d.astype(jnp.float32), w_pad, b_pad)
    return out[:M, :K]


# ----------------------------------------------------------------------------
# fused CRF kernel: NLL (numerator + forward algorithm) + Viterbi decode
# emissions / tags / mask are TIME-MAJOR (S, B, ...) — torchcrf's internal
# layout after the batch_first transpose.
# ----------------------------------------------------------------------------
def _crf_fused_kernel(em_ref, tags_ref, mask_ref, start_ref, end_ref, trans_ref,
                      nll_ref, best_ref, hist_ref):
    S, B, K = em_ref.shape
    start = start_ref[0, :]          # (K,)
    end = end_ref[0, :]              # (K,)
    trans = trans_ref[...]           # (K, K)

    iota_bk = jax.lax.broadcasted_iota(jnp.int32, (B, K), 1)

    em0 = em_ref[0]                  # (B, K)
    tags0 = tags_ref[0]              # (B,)
    oh0 = (iota_bk == tags0[:, None]).astype(jnp.float32)

    score0 = jnp.sum(oh0 * (start[None, :] + em0), axis=-1)   # start[t0] + em[0,t0]
    alpha0 = start[None, :] + em0                             # forward algorithm
    v0 = start[None, :] + em0                                 # viterbi scores

    def fwd_body(i, carry):
        score, oh_prev, last_oh, alpha, vsc = carry
        em_i = em_ref[i]                                      # (B, K)
        tags_i = tags_ref[i]                                  # (B,)
        mask_i = mask_ref[i]                                  # (B,)
        oh_i = (iota_bk == tags_i[:, None]).astype(jnp.float32)

        # ---- gold path (numerator) score -----------------------------------
        # trans[tags[i-1], :] selected via a (B,K)@(K,K) one-hot matmul
        tr_rows = jnp.dot(oh_prev, trans, preferred_element_type=jnp.float32)
        tr = jnp.sum(tr_rows * oh_i, axis=-1)                 # trans[t_{i-1}, t_i]
        em_gold = jnp.sum(em_i * oh_i, axis=-1)               # em[i, b, t_i]
        score = score + (tr + em_gold) * mask_i
        last_oh = jnp.where(mask_i[:, None] > 0.5, oh_i, last_oh)

        # ---- forward algorithm (log partition) ------------------------------
        nxt = alpha[:, :, None] + trans[None, :, :] + em_i[:, None, :]   # (B,K,K)
        nxt = _logsumexp(nxt, axis=1)                                    # (B,K)
        alpha = jnp.where(mask_i[:, None] > 0.5, nxt, alpha)

        # ---- viterbi forward + backpointers ---------------------------------
        vnxt = vsc[:, :, None] + trans[None, :, :] + em_i[:, None, :]    # (B,K,K)
        vmax = jnp.max(vnxt, axis=1)                                     # (B,K)
        iota_prev = jax.lax.broadcasted_iota(jnp.int32, (B, K, K), 1)
        # first index achieving the max (torch argmax tie-break for distinct floats)
        idx = jnp.min(jnp.where(vnxt >= vmax[:, None, :], iota_prev, K),
                      axis=1).astype(jnp.int32)                          # (B,K)
        hist_ref[i] = idx                                                # VMEM scratch
        vsc = jnp.where(mask_i[:, None] > 0.5, vmax, vsc)

        return score, oh_i, last_oh, alpha, vsc

    score, _, last_oh, alpha, vsc = jax.lax.fori_loop(
        1, S, fwd_body, (score0, oh0, oh0, alpha0, v0))

    # ---- NLL = denominator - numerator --------------------------------------
    numerator = score + jnp.sum(last_oh * end[None, :], axis=-1)
    denominator = _logsumexp(alpha + end[None, :], axis=1)
    nll_ref[0, :] = denominator - numerator

    # ---- Viterbi backtrack -> dense (B, S) tag matrix ------------------------
    mask_all = mask_ref[...]                                        # (S, B)
    seq_ends = (jnp.sum(mask_all, axis=0) - 1.0).astype(jnp.int32)  # (B,)

    final = vsc + end[None, :]
    fmax = jnp.max(final, axis=1, keepdims=True)
    best_last = jnp.min(jnp.where(final >= fmax, iota_bk, K),
                        axis=1).astype(jnp.int32)                   # (B,)

    col_iota = jax.lax.broadcasted_iota(jnp.int32, (B, S), 1)

    def bwd_body(r, carry):
        cur, acc = carry
        t = S - 1 - r
        acc = jnp.where(col_iota == t, cur[:, None], acc)           # register accum
        t_clamped = jnp.minimum(jnp.maximum(t, 1), S - 1)
        hist_t = hist_ref[t_clamped]                                # (B, K)
        sel = iota_bk == cur[:, None]
        prev = jnp.sum(jnp.where(sel, hist_t, 0), axis=1).astype(jnp.int32)
        take_prev = jnp.logical_and(t >= 1, t <= seq_ends)
        cur = jnp.where(take_prev, prev, cur)
        return cur, acc

    _, acc = jax.lax.fori_loop(
        0, S, bwd_body, (best_last, jnp.zeros((B, S), jnp.int32)))
    best_ref[...] = acc                                             # single dense store


def crf_fused_pallas(em_tbk, tags_tb, mask_tb, start, end, trans):
    """em: (S,B,K) time-major.  Returns (nll (B,), best (B,S) int32)."""
    S, B, K = em_tbk.shape
    nll, best = pl.pallas_call(
        _crf_fused_kernel,
        out_shape=(jax.ShapeDtypeStruct((1, B), jnp.float32),
                   jax.ShapeDtypeStruct((B, S), jnp.int32)),
        in_specs=_vmem_specs(6),
        out_specs=(pl.BlockSpec(memory_space=pltpu.MemorySpace.VMEM),
                   pl.BlockSpec(memory_space=pltpu.MemorySpace.VMEM)),
        scratch_shapes=[pltpu.VMEM((S, B, K), jnp.int32)],   # viterbi backpointers
    )(em_tbk.astype(jnp.float32), tags_tb.astype(jnp.int32),
      mask_tb.astype(jnp.float32), start.reshape(1, K), end.reshape(1, K),
      trans.astype(jnp.float32))
    return nll[0], best


# ----------------------------------------------------------------------------
# BertCrf re-implementation
# ----------------------------------------------------------------------------
class BertCrfPallas:
    def __init__(self, num_tags=4, vocab_size=64, type_vocab_size=2,
                 hidden_size=32, max_seq_len=16, seed=0):
        if num_tags <= 0:
            raise ValueError(f"invalid number of tags: {num_tags}")
        self.num_tags = num_tags
        ks = jax.random.split(jax.random.PRNGKey(seed), 8)
        H = hidden_size
        # deterministic stand-in "bert" parameters
        self.word_emb = 0.02 * jax.random.normal(ks[0], (vocab_size, H), jnp.float32)
        self.pos_emb = 0.02 * jax.random.normal(ks[1], (max_seq_len, H), jnp.float32)
        self.type_emb = 0.02 * jax.random.normal(ks[2], (type_vocab_size, H), jnp.float32)
        self.cls_w = 0.05 * jax.random.normal(ks[3], (H, num_tags), jnp.float32)
        self.cls_b = jnp.zeros((num_tags,), jnp.float32)
        # CRF parameters, uniform(-0.1, 0.1) like CRF.reset_parameters
        self.start_transitions = jax.random.uniform(ks[4], (num_tags,), jnp.float32, -0.1, 0.1)
        self.end_transitions = jax.random.uniform(ks[5], (num_tags,), jnp.float32, -0.1, 0.1)
        self.transitions = jax.random.uniform(ks[6], (num_tags, num_tags), jnp.float32, -0.1, 0.1)

    def emissions_time_major(self, input_ids, token_type_ids):
        """Emissions in CRF (time-major) layout: (S, B, K)."""
        B, S = input_ids.shape
        ids_t = input_ids.T                                   # (S, B)
        tt_t = token_type_ids.T
        hidden = (self.word_emb[ids_t]                        # glue: embedding gathers
                  + self.pos_emb[:S][:, None, :]
                  + self.type_emb[tt_t])                      # (S, B, H)
        em = classifier_pallas(hidden.reshape(S * B, -1), self.cls_w, self.cls_b)
        return em.reshape(S, B, self.num_tags)

    def __call__(self, input_ids, tags=None, attention_mask=None,
                 token_type_ids=None, decode=True, reduction='mean'):
        if reduction not in ('none', 'sum', 'mean', 'token_mean'):
            raise ValueError(f'invalid reduction {reduction}')
        if token_type_ids is None:
            token_type_ids = jnp.zeros_like(input_ids)
        B, S = input_ids.shape

        em_full = self.emissions_time_major(input_ids, token_type_ids)   # (S, B, K)
        em_t = em_full[1:-1]                                             # (S-2, B, K)
        mask_t = (attention_mask[:, 2:] != 0).T.astype(jnp.float32)      # (S-2, B)
        if tags is not None:
            tags_t = tags[:, 1:-1].T.astype(jnp.int32)
        else:
            tags_t = jnp.zeros((S - 2, B), jnp.int32)                    # dummy, loss unused

        nll, best = crf_fused_pallas(em_t, tags_t, mask_t,
                                     self.start_transitions,
                                     self.end_transitions,
                                     self.transitions)

        loss = None
        if tags is not None:
            if reduction == 'none':
                loss = nll
            elif reduction == 'sum':
                loss = jnp.sum(nll)
            elif reduction == 'mean':
                loss = jnp.mean(nll)
            else:  # token_mean
                loss = jnp.sum(nll) / jnp.sum(mask_t)

        if decode:
            lengths = jnp.sum(mask_t, axis=0).astype(jnp.int32)
            # ragged List[List[int]] output requires a host round-trip: do it once
            best_np, len_np = jax.device_get((best, lengths))
            tag_list = [best_np[b, :int(len_np[b])].tolist() for b in range(B)]
            return [loss, tag_list]
        return [loss]


# ----------------------------------------------------------------------------
# plain numpy references (mirror the torch code) for a correctness check
# ----------------------------------------------------------------------------
def _ref_crf_nll(em, tags, mask, start, end, trans):
    S, B, K = em.shape
    ar = np.arange(B)
    score = start[tags[0]] + em[0, ar, tags[0]]
    for i in range(1, S):
        score = score + trans[tags[i - 1], tags[i]] * mask[i]
        score = score + em[i, ar, tags[i]] * mask[i]
    seq_ends = mask.sum(0).astype(np.int64) - 1
    last_tags = tags[seq_ends, ar]
    numerator = score + end[last_tags]

    alpha = start[None] + em[0]
    for i in range(1, S):
        nxt = alpha[:, :, None] + trans[None] + em[i][:, None, :]
        m = nxt.max(axis=1, keepdims=True)
        nxt = m[:, 0, :] + np.log(np.exp(nxt - m).sum(axis=1))
        alpha = np.where(mask[i][:, None] > 0, nxt, alpha)
    alpha = alpha + end[None]
    m = alpha.max(axis=1, keepdims=True)
    denom = m[:, 0] + np.log(np.exp(alpha - m).sum(axis=1))
    return denom - numerator


def _ref_viterbi(em, mask, start, end, trans):
    S, B, K = em.shape
    score = start[None] + em[0]
    history = []
    for i in range(1, S):
        nxt = score[:, :, None] + trans[None] + em[i][:, None, :]
        idx = nxt.argmax(axis=1)
        best = nxt.max(axis=1)
        score = np.where(mask[i][:, None] > 0, best, score)
        history.append(idx)
    score = score + end[None]
    seq_ends = mask.sum(0).astype(int) - 1
    out = []
    for b in range(B):
        best_last = int(score[b].argmax())
        tags_b = [best_last]
        for hist in reversed(history[:seq_ends[b]]):
            best_last = int(hist[b][tags_b[-1]])
            tags_b.append(best_last)
        tags_b.reverse()
        out.append(tags_b)
    return out


# ----------------------------------------------------------------------------
if __name__ == "__main__":
    B, S = 2, 10
    num_tags = 4
    vocab = 64

    key = jax.random.PRNGKey(0)
    k1, k2 = jax.random.split(key, 2)
    input_ids = jax.random.randint(k1, (B, S), 0, vocab, dtype=jnp.int32)
    token_type_ids = jnp.zeros((B, S), jnp.int32)
    tags = jax.random.randint(k2, (B, S), 0, num_tags, dtype=jnp.int32)
    # sequence 0 is full length; sequence 1 has 2 padding tokens at the end
    attention_mask = jnp.array([[1] * S, [1] * (S - 2) + [0, 0]], dtype=jnp.int32)

    model = BertCrfPallas(num_tags=num_tags, vocab_size=vocab, hidden_size=32,
                          max_seq_len=S, seed=0)

    loss, tag_list = model(input_ids, tags=tags, attention_mask=attention_mask,
                           token_type_ids=token_type_ids, decode=True,
                           reduction='mean')
    loss = jax.block_until_ready(loss)

    # --- check classifier kernel against plain matmul ------------------------
    hidden_t = (model.word_emb[input_ids.T] + model.pos_emb[:S][:, None, :]
                + model.type_emb[token_type_ids.T])               # (S, B, H)
    em_kernel = model.emissions_time_major(input_ids, token_type_ids)
    em_ref = hidden_t.reshape(S * B, -1) @ model.cls_w + model.cls_b
    np.testing.assert_allclose(np.asarray(em_kernel).reshape(S * B, num_tags),
                               np.asarray(em_ref), rtol=1e-5, atol=1e-5)

    # --- check fused CRF NLL + Viterbi against numpy references --------------
    em_t_np = np.asarray(em_kernel)[1:-1]                         # (S-2, B, K)
    mask_t_np = np.asarray((attention_mask[:, 2:] != 0).T).astype(np.float32)
    tags_t_np = np.asarray(tags[:, 1:-1].T)
    nll_ref = _ref_crf_nll(em_t_np, tags_t_np, mask_t_np,
                           np.asarray(model.start_transitions),
                           np.asarray(model.end_transitions),
                           np.asarray(model.transitions))
    np.testing.assert_allclose(float(loss), float(nll_ref.mean()),
                               rtol=1e-4, atol=1e-4)

    decode_ref = _ref_viterbi(em_t_np, mask_t_np,
                              np.asarray(model.start_transitions),
                              np.asarray(model.end_transitions),
                              np.asarray(model.transitions))
    assert tag_list == decode_ref, (tag_list, decode_ref)

    print("KERNEL_OK")
</pallas_src>

<mosaic_0001>
module attributes {stable_mosaic.version = 11 : i64} {
  func.func @_classifier_kernel(%arg0: i32, %arg1: memref<24x32xf32, #tpu.memory_space<vmem>>, %arg2: memref<32x128xf32, #tpu.memory_space<vmem>>, %arg3: memref<1x128xf32, #tpu.memory_space<vmem>>, %arg4: memref<24x128xf32, #tpu.memory_space<vmem>>) attributes {dimension_semantics = [#tpu.dimension_semantics<parallel>], iteration_bounds = array<i64: 1>, scalar_prefetch = 0 : i64, scratch_operands = 0 : i64, tpu.core_type = #tpu.core_type<tc>, window_params = [{transform_indices = @transform_0, window_bounds = array<i64: 24, 32>}, {pipeline_mode = #tpu.pipeline_mode<synchronous>, transform_indices = @transform_1, window_bounds = array<i64: 32, 128>}, {pipeline_mode = #tpu.pipeline_mode<synchronous>, transform_indices = @transform_2, window_bounds = array<i64: 1, 128>}, {transform_indices = @transform_3, window_bounds = array<i64: 24, 128>}]} {
    %c0 = arith.constant 0 : index
    %c0_0 = arith.constant 0 : index
    %0 = vector.load %arg1[%c0, %c0_0] : memref<24x32xf32, #tpu.memory_space<vmem>>, vector<24x32xf32>
    %c0_1 = arith.constant 0 : index
    %c0_2 = arith.constant 0 : index
    %1 = vector.load %arg2[%c0_1, %c0_2] : memref<32x128xf32, #tpu.memory_space<vmem>>, vector<32x128xf32>
    %cst = arith.constant dense<0.000000e+00> : vector<24x128xf32>
    %2 = tpu.matmul %0, %1, %cst {dimension_numbers = #tpu.dot_dimension_numbers<[1], [0], [0], [1], [0, 0, 1, 1], [], []>} : vector<24x32xf32>, vector<32x128xf32>, vector<24x128xf32> -> vector<24x128xf32>
    %c0_3 = arith.constant 0 : index
    %c0_4 = arith.constant 0 : index
    %3 = vector.load %arg3[%c0_3, %c0_4] : memref<1x128xf32, #tpu.memory_space<vmem>>, vector<1x128xf32>
    %4 = vector.broadcast %3 : vector<1x128xf32> to vector<24x128xf32>
    %5 = arith.addf %2, %4 : vector<24x128xf32>
    %c0_5 = arith.constant 0 : index
    %c0_6 = arith.constant 0 : index
    %6 = vector.load %arg4[%c0_5, %c0_6] : memref<24x128xf32, #tpu.memory_space<vmem>>, vector<24x128xf32>
    tpu.vector_store %arg4[%c0_5, %c0_6], %5 {strides = array<i32>} : memref<24x128xf32, #tpu.memory_space<vmem>>, vector<24x128xf32>,
    return
  }
  func.func @transform_0(%arg0: i32) -> (i32, i32) {
    %c0_i32 = arith.constant 0 : i32
    %c0_i32_0 = arith.constant 0 : i32
    return %arg0, %c0_i32 : i32, i32
  }
  func.func @transform_1(%arg0: i32) -> (i32, i32) {
    %c0_i32 = arith.constant 0 : i32
    %c0_i32_0 = arith.constant 0 : i32
    %c0_i32_1 = arith.constant 0 : i32
    return %c0_i32, %c0_i32_0 : i32, i32
  }
  func.func @transform_2(%arg0: i32) -> (i32, i32) {
    %c0_i32 = arith.constant 0 : i32
    %c0_i32_0 = arith.constant 0 : i32
    %c0_i32_1 = arith.constant 0 : i32
    return %c0_i32, %c0_i32_0 : i32, i32
  }
  func.func @transform_3(%arg0: i32) -> (i32, i32) {
    %c0_i32 = arith.constant 0 : i32
    %c0_i32_0 = arith.constant 0 : i32
    return %arg0, %c0_i32 : i32, i32
  }
}

</mosaic_0001>

<bundles_post_ra>
// kernel: tpu_custom_call.1
= control target key start
LH: loop header
LB: loop body
LE: loop exit
PB: predicated region body
PF: predicated region fallthrough
CT: control target
= control target key end

     0   :  { %8 = vsyncpa [#allocation3], 0  ;;  %s365_s0 = inlined_call_operand.hbm [shape: f32[24,32], index: 0, kind: input, shape index: {}]   ;;  %s366_s1 = inlined_call_operand.hbm [shape: f32[32,128], index: 1, kind: input, shape index: {}]   ;;  %s367_s2 = inlined_call_operand.vmem [shape: f32[1,128], index: 2, kind: input, shape index: {}]   ;;  %s368_s3 = inlined_call_operand.hbm [shape: f32[24,128], index: 3, kind: output, shape index: {}]  }
   0x1   :  { %9 = vsyncpa [#allocation6], 0 }
   0x2   :  { %10 = vsyncpa [#allocation4], 0  ;;  %s286_s12 = smov [#allocation2]   ;;  %s214_s16 = scalar_lea.hbm %s365_s0, 384 }
   0x3   :  { %s16_s13 = sshll.u32 %s286_s12, 4  ;;  %p215_p0 = scmp.ne.s32.totalorder %s365_s0, %s214_s16  ;;  %s17_s13 = int_to_ptr.vmem [resolvable:$true] %s16_s13 }
   0x4   :  { %p218_p1 = scmp.lt.u32.totalorder %s214_s16, %s365_s0 }
   0x6   :  { %p220_p2 = pnand %p218_p1, %p215_p0 }
   0x8   :  { %223 = shalt.err (!%p220_p2)
}
   0x9   :  { %s224_s21 = scalar_lea.vmem %s17_s13, 384  ;;  %p229_p4 = scmp.lt.s32.totalorder %s17_s13, %s17_s13 }
   0xa   :  { %p225_p3 = scmp.ne.s32.totalorder %s17_s13, %s224_s21  ;;  %p230_p5 = scmp.lt.s32.totalorder %s224_s21, %s224_s21 }
   0xc   :  { %p231_p6 = por %p230_p5, %p229_p4 }
   0xe   :  { %p232_p7 = pnand %p231_p6, %p225_p3 }
  0x10   :  { %235 = shalt.err (!%p232_p7)
}
  0x11   :  { %s287_s22 = smov 128   ;;  %s288_s23 = smov 8  }
  0x12   :  { %22 = dma.hbm_to_vmem [thread:$0]  %s365_s0, 384, %s17_s13, [#allocation3], %s287_s22, %s287_s22, %s288_s23  }
  0x13   :  { %s289_s26 = smov [#allocation5]   ;;  %s236_s30 = scalar_lea.hbm %s366_s1, 512 }
  0x14   :  { %s28_s27 = sshll.u32 %s289_s26, 4  ;;  %p237_p8 = scmp.ne.s32.totalorder %s366_s1, %s236_s30  ;;  %s29_s27 = int_to_ptr.vmem [resolvable:$true] %s28_s27 }
  0x15   :  { %p240_p9 = scmp.lt.u32.totalorder %s236_s30, %s366_s1 }
  0x17   :  { %p242_p10 = pnand %p240_p9, %p237_p8 }
  0x19   :  { %245 = shalt.err (!%p242_p10)
}
  0x1a   :  { %s246_s8 = scalar_lea.vmem %s29_s27, 512  ;;  %p251_p12 = scmp.lt.s32.totalorder %s29_s27, %s29_s27 }
  0x1b   :  { %p247_p11 = scmp.ne.s32.totalorder %s29_s27, %s246_s8  ;;  %p252_p13 = scmp.lt.s32.totalorder %s246_s8, %s246_s8 }
  0x1d   :  { %p253_p0 = por %p252_p13, %p251_p12 }
  0x1f   :  { %p254_p1 = pnand %p253_p0, %p247_p11 }
  0x21   :  { %257 = shalt.err (!%p254_p1)
}
  0x22   :  { %34 = dma.hbm_to_vmem [thread:$0]  %s366_s1, 512, %s29_s27, [#allocation6], %s287_s22, %s287_s22, %s288_s23  }
  0x23   :  { %280 = dma.done.wait [#allocation3], 384  }
  0x24   :  { %281 = vsyncadd [#allocation3], 4294966912 }
  0x25   :  { %282 = dma.done.wait [#allocation6], 512  }
  0x26   :  { %283 = vsyncadd [#allocation6], 4294966784  ;;  %v290_v0 = vmov 0.0|0.0   ;;  %vm291_vm0 = vmmov 0   ;;  %v292_v1 = vmov 0.0   ;;  %v46_v2 = vld [vmem:[#allocation5] sm:$0xff] }
  0x27   :  { %202 = vmatprep.subr.bf16.mxu1 %v290_v0  ;;  %196 = vmatprep.subr.bf16.mxu0 %v290_v0  ;;  %v47_v3 = vld [vmem:[#allocation5 + $0x8] sm:$0xff]  ;;  %v48_v4 = vld [vmem:[#allocation5 + $0x10] sm:$0xff]  ;;  %v49_v6 = vld [vmem:[#allocation5 + $0x18] sm:$0xff]  ;;  %vm57_vm1 = vcmask 261120   ;;  %s293_s11 = smov [#allocation7]  }
  0x28   :  { %190 = vmatprep.mubr.msk.f32.mxu1 %vm291_vm0, %v292_v1  ;;  %187 = vmatprep.mubr.msk.f32.mxu0 %vm291_vm0, %v292_v1  ;;  %v197_v5 = vpack.c.bf16 %v47_v3, %v46_v2  ;;  %v200_v7 = vpack.c.bf16 %v49_v6, %v48_v4  ;;  %v44_v8 = vld [vmem:[#allocation2 + $0x8] sm:$0xff]  ;;  %v43_v9 = vld [vmem:[#allocation2] sm:$0xff]  ;;  %v45_v10 = vld [vmem:[#allocation2 + $0x10] sm:$0xff]  ;;  %s155_s12 = sshll.u32 %s293_s11, 4  ;;  %s156_s12 = int_to_ptr.vmem [resolvable:$true] %s155_s12 }
  0x29   :  { %v168_v11 = vld [vmem:[%s367_s2] ss:$0 sm:$0xff]  ;;  %s258_s13 = scalar_lea.vmem %s156_s12, 384  ;;  %p263_p3 = scmp.lt.s32.totalorder %s156_s12, %s156_s12 }
  0x2a   :  { %204 = vmatpush3.bf16.msra.mxu1 %v197_v5  ;;  %198 = vmatpush3.bf16.msra.mxu0 %v197_v5  ;;  %p259_p2 = scmp.ne.s32.totalorder %s156_s12, %s258_s13  ;;  %p264_p4 = scmp.lt.s32.totalorder %s258_s13, %s258_s13 }
  0x2b   :  { %203 = vmatprep.subr.bf16.mxu1 %v290_v0  ;;  %199 = vmatprep.subr.bf16.mxu0 %v290_v0 }
  0x2c   :  { %p265_p5 = por %p264_p4, %p263_p3 }
  0x2e   :  { %205 = vmatpush3.bf16.msra.mxu1 %v200_v7  ;;  %201 = vmatpush3.bf16.msra.mxu0 %v200_v7  ;;  %p266_p6 = pnand %p265_p5, %p259_p2 }
  0x31   :  { %191 = vmatmul.mubr.msk.f32.vlgmr.msra.gmra.mrb[0].mxu1 %vm57_vm1, %v44_v8  ;;  %188 = vmatmul.mubr.msk.f32.vlgmr.msra.gmra.mrb[0].mxu0 %vm57_vm1, %v43_v9 }
  0x32   :  { %193 = vmatprep.mubr.msk.f32.mxu1 %vm291_vm0, %v292_v1 }
  0x35   :  { %194 = vmatmul.mubr.msk.f32.gmra.mrb[2].mxu1 %vm57_vm1, %v45_v10 }
 0x104   :  { %v138_v12 = vpop.f32.mrb[0].mxu1  ;;  %v133_v13 = vpop.f32.mrb[0].mxu0 }
 0x105   :  { %v139_v14 = vadd.f32 %v168_v11, %v138_v12  ;;  %v192_v15 = vpop.f32.mrb[1].mxu1  ;;  %v134_v16 = vadd.f32 %v168_v11, %v133_v13  ;;  %v189_v17 = vpop.f32.mrb[1].mxu0 }
 0x107   :  { %148 = vst [vmem:[#allocation7 + $0x8] sm:$0xff] %v139_v14  ;;  %147 = vst [vmem:[#allocation7] sm:$0xff] %v134_v16 }
 0x108   :  { %v143_v18 = vpop.f32.mrb[2].mxu1 }
 0x109   :  { %v144_v19 = vadd.f32 %v168_v11, %v143_v18  ;;  %v195_v20 = vpop.f32.mrb[3].mxu1 }
 0x10b   :  { %149 = vst [vmem:[#allocation7 + $0x10] sm:$0xff] %v144_v19 }
 0x10c   :  { %269 = shalt.err (!%p266_p6)
}
 0x10d   :  { %s270_s15 = scalar_lea.hbm %s368_s3, 384 }
 0x10e   :  { %p271_p7 = scmp.ne.s32.totalorder %s368_s3, %s270_s15  ;;  %p274_p8 = scmp.lt.u32.totalorder %s270_s15, %s368_s3 }
 0x110   :  { %p276_p9 = pnand %p274_p8, %p271_p7 }
 0x112   :  { %279 = shalt.err (!%p276_p9)
}
 0x113   :  { %161 = dma.vmem_to_hbm [thread:$0]  %s156_s12, 384, %s368_s3, [#allocation4], %s287_s22, %s287_s22, %s288_s23  }
 0x114   :  { %284 = dma.done.wait [#allocation4], 384  }
 0x115   :  { %285 = vsyncadd [#allocation4], 4294966912 }
 0x116   :  { %165 = vsyncpa [#allocation3], 1 }
 0x117   :  { %166 = vsyncpa [#allocation6], 1 }
 0x118   :  { %167 = vsyncpa [#allocation4], 1 }

</bundles_post_ra>
